<compile_context>
chip_gen: v6e
topology: v6e:2x2x1
jax: 0.10.0
libtpu: 0.0.40
codegen_flags: <defaults>
</compile_context>

<pallas_src>
import jax
import jax.numpy as jnp
from jax.experimental import pallas as pl
from jax.experimental.pallas import tpu as pltpu

STATE_DIM = 2
ACTION_DIM = 1
HIDDEN_DIM = 64

# Conservative per-batch-column VMEM model (f32, feature-major):
#   state/action/out blocks sublane-pad to (8, TB) and are double-buffered
#     -> 3 * 2 * 8 * 4  = 192 B/col
#   h1/h2 + one compiler temp at (64, TB) f32 -> 3 * 64 * 4 = 768 B/col
#   total ~960 B/col, rounded up for headroom.
_BYTES_PER_COL = 1152


def dynamics_mlp_kernel(s_ref, a_ref, w1_ref, b1_ref, w2_ref, b2_ref,
                        w3_ref, b3_ref, o_ref):
    # Feature-major tiles: s (STATE_DIM, TB), a (ACTION_DIM, TB), output (STATE_DIM, TB).
    s = s_ref[...]
    a = a_ref[...]
    w1 = w1_ref[...]                       # (HIDDEN, STATE+ACTION) = (64, 3)

    # Layer 1 on the VPU: K=3 contraction as 3 broadcast FMAs (no MXU push for a
    # nearly-empty K), keeping the MXU dependency chain to layers 2/3 only.
    h1 = (w1[:, 0:1] * s[0:1, :]
          + w1[:, 1:2] * s[1:2, :]
          + w1[:, 2:3] * a
          + b1_ref[...])                   # (64, TB)
    h1 = jnp.maximum(h1, 0.0)

    # Layer 2 on the MXU: (64, 64) @ (64, TB); batch on lanes -> dense MXU output.
    h2 = jnp.dot(w2_ref[...], h1, preferred_element_type=jnp.float32) + b2_ref[...]
    h2 = jnp.maximum(h2, 0.0)

    # Layer 3: (2, 64) @ (64, TB) -> (2, TB); lane-dense, unmasked stores.
    y = jnp.dot(w3_ref[...], h2, preferred_element_type=jnp.float32) + b3_ref[...]
    o_ref[...] = y.astype(o_ref.dtype)


def _choose_tile_cols(batch, max_tile_cols=None):
    """Pick the batch tile (lane dim, multiple of 128) from the VMEM budget."""
    try:
        phys = int(getattr(pltpu.get_tpu_info(), "vmem_capacity_bytes", 64 << 20))
    except Exception:  # older API / non-TPU tracing
        phys = 64 << 20  # conservative: v7x per-TC physical VMEM
    # Scoped limit we ask the compiler for: below physical with headroom, above the
    # small per-generation defaults (16/32 MiB) so big tiles aren't rejected.
    vmem_limit = max(32 << 20, min(phys - (16 << 20), 100 << 20))
    # Spend roughly half of it on the batch tile (rest: double-buffer slack, temps).
    max_tile = (vmem_limit // 2) // _BYTES_PER_COL
    max_tile = max(128, (max_tile // 128) * 128)
    max_tile = min(max_tile, 32768)
    if max_tile_cols is not None:
        max_tile = max(128, (int(max_tile_cols) // 128) * 128)
    if batch <= max_tile:
        # Single full-extent block: no (8,128) divisibility constraint, no padding.
        return batch, vmem_limit
    return max_tile, vmem_limit


def dynamics_model_forward_fm(state_fm, action_fm, params, *, max_tile_cols=None):
    """Feature-major entry: state_fm [STATE_DIM, B], action_fm [ACTION_DIM, B]
    -> next_state [STATE_DIM, B]."""
    w1, b1, w2, b2, w3, b3 = params  # PyTorch-native [out, in] weights, [out, 1] biases
    state_fm = state_fm.astype(jnp.float32)
    action_fm = action_fm.astype(jnp.float32)
    B = state_fm.shape[1]

    tile, vmem_limit = _choose_tile_cols(B, max_tile_cols)
    grid = (pl.cdiv(B, tile),)  # ragged last block (if any) is padded/masked by Pallas

    return pl.pallas_call(
        dynamics_mlp_kernel,
        out_shape=jax.ShapeDtypeStruct((STATE_DIM, B), jnp.float32),
        grid_spec=pltpu.PrefetchScalarGridSpec(
            num_scalar_prefetch=0,
            grid=grid,
            in_specs=[
                pl.BlockSpec((STATE_DIM, tile), lambda i: (0, i)),    # state tile
                pl.BlockSpec((ACTION_DIM, tile), lambda i: (0, i)),   # action tile
                pl.BlockSpec((HIDDEN_DIM, STATE_DIM + ACTION_DIM), lambda i: (0, 0)),  # W1
                pl.BlockSpec((HIDDEN_DIM, 1), lambda i: (0, 0)),      # b1
                pl.BlockSpec((HIDDEN_DIM, HIDDEN_DIM), lambda i: (0, 0)),  # W2
                pl.BlockSpec((HIDDEN_DIM, 1), lambda i: (0, 0)),      # b2
                pl.BlockSpec((STATE_DIM, HIDDEN_DIM), lambda i: (0, 0)),   # W3
                pl.BlockSpec((STATE_DIM, 1), lambda i: (0, 0)),       # b3
            ],
            out_specs=pl.BlockSpec((STATE_DIM, tile), lambda i: (0, i)),
        ),
        compiler_params=pltpu.CompilerParams(
            dimension_semantics=("parallel",),
            vmem_limit_bytes=int(vmem_limit),
        ),
    )(state_fm, action_fm, w1, b1, w2, b2, w3, b3)


def dynamics_model_forward(state, action, params, *, max_tile_cols=None):
    """Batch-major convenience wrapper (PyTorch semantics):
    state [B, STATE_DIM], action [B, ACTION_DIM] -> next_state [B, STATE_DIM].
    Callers that can produce/consume [F, B] directly should use
    dynamics_model_forward_fm and skip the cheap transposes."""
    out_fm = dynamics_model_forward_fm(state.T, action.T, params,
                                       max_tile_cols=max_tile_cols)
    return out_fm.T


def init_params(key):
    """Deterministic init mimicking nn.Linear (uniform in +-1/sqrt(fan_in)).
    Weights stored PyTorch-native [out, in]; biases as [out, 1] columns."""
    ks = jax.random.split(key, 6)

    def linear(kw, kb, fan_in, fan_out):
        bound = float(fan_in) ** -0.5
        w = jax.random.uniform(kw, (fan_out, fan_in), jnp.float32, -bound, bound)
        b = jax.random.uniform(kb, (fan_out, 1), jnp.float32, -bound, bound)
        return w, b

    w1, b1 = linear(ks[0], ks[1], STATE_DIM + ACTION_DIM, HIDDEN_DIM)
    w2, b2 = linear(ks[2], ks[3], HIDDEN_DIM, HIDDEN_DIM)
    w3, b3 = linear(ks[4], ks[5], HIDDEN_DIM, STATE_DIM)
    return (w1, b1, w2, b2, w3, b3)


def reference_forward(state, action, params):
    """Pure-JAX reference matching the PyTorch module (batch-major)."""
    w1, b1, w2, b2, w3, b3 = params
    x = jnp.concatenate([state, action], axis=-1)
    h1 = jnp.maximum(x @ w1.T + b1.T, 0.0)
    h2 = jnp.maximum(h1 @ w2.T + b2.T, 0.0)
    return h2 @ w3.T + b3.T


if __name__ == "__main__":
    key = jax.random.PRNGKey(0)
    k_params, k_state, k_action = jax.random.split(key, 3)
    params = init_params(k_params)

    # Small demo batch: single full-extent block, no padding.
    B = 32
    state = jax.random.normal(k_state, (B, STATE_DIM), jnp.float32)
    action = jax.random.normal(k_action, (B, ACTION_DIM), jnp.float32)
    out = jax.block_until_ready(dynamics_model_forward(state, action, params))
    ref = reference_forward(state, action, params)
    assert out.shape == (B, STATE_DIM)
    assert jnp.allclose(out, ref, atol=1e-5, rtol=1e-5), "mismatch vs reference (B=32)"

    # Exercise the multi-step + ragged-edge path with a forced small tile.
    B2 = 300
    state2 = jax.random.normal(k_state, (B2, STATE_DIM), jnp.float32)
    action2 = jax.random.normal(k_action, (B2, ACTION_DIM), jnp.float32)
    out2 = jax.block_until_ready(
        dynamics_model_forward(state2, action2, params, max_tile_cols=128))
    ref2 = reference_forward(state2, action2, params)
    assert out2.shape == (B2, STATE_DIM)
    assert jnp.allclose(out2, ref2, atol=1e-5, rtol=1e-5), "mismatch vs reference (B=300)"

    print("KERNEL_OK")
</pallas_src>

<mosaic_0001>
module attributes {stable_mosaic.version = 11 : i64} {
  func.func @dynamics_mlp_kernel(%arg0: i32, %arg1: memref<2x32xf32, #tpu.memory_space<vmem>>, %arg2: memref<1x32xf32, #tpu.memory_space<vmem>>, %arg3: memref<64x3xf32, #tpu.memory_space<vmem>>, %arg4: memref<64x1xf32, #tpu.memory_space<vmem>>, %arg5: memref<64x64xf32, #tpu.memory_space<vmem>>, %arg6: memref<64x1xf32, #tpu.memory_space<vmem>>, %arg7: memref<2x64xf32, #tpu.memory_space<vmem>>, %arg8: memref<2x1xf32, #tpu.memory_space<vmem>>, %arg9: memref<2x32xf32, #tpu.memory_space<vmem>>) attributes {dimension_semantics = [#tpu.dimension_semantics<parallel>], iteration_bounds = array<i64: 1>, scalar_prefetch = 0 : i64, scratch_operands = 0 : i64, tpu.core_type = #tpu.core_type<tc>, window_params = [{transform_indices = @transform_0, window_bounds = array<i64: 2, 32>}, {transform_indices = @transform_1, window_bounds = array<i64: 1, 32>}, {pipeline_mode = #tpu.pipeline_mode<synchronous>, transform_indices = @transform_2, window_bounds = array<i64: 64, 3>}, {pipeline_mode = #tpu.pipeline_mode<synchronous>, transform_indices = @transform_3, window_bounds = array<i64: 64, 1>}, {pipeline_mode = #tpu.pipeline_mode<synchronous>, transform_indices = @transform_4, window_bounds = array<i64: 64, 64>}, {pipeline_mode = #tpu.pipeline_mode<synchronous>, transform_indices = @transform_5, window_bounds = array<i64: 64, 1>}, {pipeline_mode = #tpu.pipeline_mode<synchronous>, transform_indices = @transform_6, window_bounds = array<i64: 2, 64>}, {pipeline_mode = #tpu.pipeline_mode<synchronous>, transform_indices = @transform_7, window_bounds = array<i64: 2, 1>}, {transform_indices = @transform_8, window_bounds = array<i64: 2, 32>}]} {
    %c0 = arith.constant 0 : index
    %c0_0 = arith.constant 0 : index
    %0 = vector.load %arg1[%c0, %c0_0] : memref<2x32xf32, #tpu.memory_space<vmem>>, vector<2x32xf32>
    %c0_1 = arith.constant 0 : index
    %c0_2 = arith.constant 0 : index
    %1 = vector.load %arg2[%c0_1, %c0_2] : memref<1x32xf32, #tpu.memory_space<vmem>>, vector<1x32xf32>
    %c0_3 = arith.constant 0 : index
    %c0_4 = arith.constant 0 : index
    %2 = vector.load %arg3[%c0_3, %c0_4] : memref<64x3xf32, #tpu.memory_space<vmem>>, vector<64x3xf32>
    %3 = vector.extract_strided_slice %2 {offsets = [0, 0], sizes = [64, 1], strides = [1, 1]} : vector<64x3xf32> to vector<64x1xf32>
    %4 = vector.extract_strided_slice %0 {offsets = [0, 0], sizes = [1, 32], strides = [1, 1]} : vector<2x32xf32> to vector<1x32xf32>
    %5 = vector.broadcast %3 : vector<64x1xf32> to vector<64x32xf32>
    %6 = vector.broadcast %4 : vector<1x32xf32> to vector<64x32xf32>
    %7 = arith.mulf %5, %6 : vector<64x32xf32>
    %8 = vector.extract_strided_slice %2 {offsets = [0, 1], sizes = [64, 1], strides = [1, 1]} : vector<64x3xf32> to vector<64x1xf32>
    %9 = vector.extract_strided_slice %0 {offsets = [1, 0], sizes = [1, 32], strides = [1, 1]} : vector<2x32xf32> to vector<1x32xf32>
    %10 = vector.broadcast %8 : vector<64x1xf32> to vector<64x32xf32>
    %11 = vector.broadcast %9 : vector<1x32xf32> to vector<64x32xf32>
    %12 = arith.mulf %10, %11 : vector<64x32xf32>
    %13 = arith.addf %7, %12 : vector<64x32xf32>
    %14 = vector.extract_strided_slice %2 {offsets = [0, 2], sizes = [64, 1], strides = [1, 1]} : vector<64x3xf32> to vector<64x1xf32>
    %15 = vector.broadcast %14 : vector<64x1xf32> to vector<64x32xf32>
    %16 = vector.broadcast %1 : vector<1x32xf32> to vector<64x32xf32>
    %17 = arith.mulf %15, %16 : vector<64x32xf32>
    %18 = arith.addf %13, %17 : vector<64x32xf32>
    %c0_5 = arith.constant 0 : index
    %c0_6 = arith.constant 0 : index
    %19 = vector.load %arg4[%c0_5, %c0_6] : memref<64x1xf32, #tpu.memory_space<vmem>>, vector<64x1xf32>
    %20 = vector.broadcast %19 : vector<64x1xf32> to vector<64x32xf32>
    %21 = arith.addf %18, %20 : vector<64x32xf32>
    %cst = arith.constant 0.000000e+00 : f32
    %22 = vector.broadcast %cst : f32 to vector<64x32xf32>
    %23 = arith.maximumf %21, %22 : vector<64x32xf32>
    %c0_7 = arith.constant 0 : index
    %c0_8 = arith.constant 0 : index
    %24 = vector.load %arg5[%c0_7, %c0_8] : memref<64x64xf32, #tpu.memory_space<vmem>>, vector<64x64xf32>
    %cst_9 = arith.constant dense<0.000000e+00> : vector<64x32xf32>
    %25 = tpu.matmul %24, %23, %cst_9 {dimension_numbers = #tpu.dot_dimension_numbers<[1], [0], [0], [1], [0, 0, 1, 1], [], []>} : vector<64x64xf32>, vector<64x32xf32>, vector<64x32xf32> -> vector<64x32xf32>
    %c0_10 = arith.constant 0 : index
    %c0_11 = arith.constant 0 : index
    %26 = vector.load %arg6[%c0_10, %c0_11] : memref<64x1xf32, #tpu.memory_space<vmem>>, vector<64x1xf32>
    %27 = vector.broadcast %26 : vector<64x1xf32> to vector<64x32xf32>
    %28 = arith.addf %25, %27 : vector<64x32xf32>
    %cst_12 = arith.constant 0.000000e+00 : f32
    %29 = vector.broadcast %cst_12 : f32 to vector<64x32xf32>
    %30 = arith.maximumf %28, %29 : vector<64x32xf32>
    %c0_13 = arith.constant 0 : index
    %c0_14 = arith.constant 0 : index
    %31 = vector.load %arg7[%c0_13, %c0_14] : memref<2x64xf32, #tpu.memory_space<vmem>>, vector<2x64xf32>
    %cst_15 = arith.constant dense<0.000000e+00> : vector<2x32xf32>
    %32 = tpu.matmul %31, %30, %cst_15 {dimension_numbers = #tpu.dot_dimension_numbers<[1], [0], [0], [1], [0, 0, 1, 1], [], []>} : vector<2x64xf32>, vector<64x32xf32>, vector<2x32xf32> -> vector<2x32xf32>
    %c0_16 = arith.constant 0 : index
    %c0_17 = arith.constant 0 : index
    %33 = vector.load %arg8[%c0_16, %c0_17] : memref<2x1xf32, #tpu.memory_space<vmem>>, vector<2x1xf32>
    %34 = vector.broadcast %33 : vector<2x1xf32> to vector<2x32xf32>
    %35 = arith.addf %32, %34 : vector<2x32xf32>
    %c0_18 = arith.constant 0 : index
    %c0_19 = arith.constant 0 : index
    %36 = vector.load %arg9[%c0_18, %c0_19] : memref<2x32xf32, #tpu.memory_space<vmem>>, vector<2x32xf32>
    tpu.vector_store %arg9[%c0_18, %c0_19], %35 {strides = array<i32>} : memref<2x32xf32, #tpu.memory_space<vmem>>, vector<2x32xf32>,
    return
  }
  func.func @transform_0(%arg0: i32) -> (i32, i32) {
    %c0_i32 = arith.constant 0 : i32
    %c0_i32_0 = arith.constant 0 : i32
    return %c0_i32, %arg0 : i32, i32
  }
  func.func @transform_1(%arg0: i32) -> (i32, i32) {
    %c0_i32 = arith.constant 0 : i32
    %c0_i32_0 = arith.constant 0 : i32
    return %c0_i32, %arg0 : i32, i32
  }
  func.func @transform_2(%arg0: i32) -> (i32, i32) {
    %c0_i32 = arith.constant 0 : i32
    %c0_i32_0 = arith.constant 0 : i32
    %c0_i32_1 = arith.constant 0 : i32
    return %c0_i32, %c0_i32_0 : i32, i32
  }
  func.func @transform_3(%arg0: i32) -> (i32, i32) {
    %c0_i32 = arith.constant 0 : i32
    %c0_i32_0 = arith.constant 0 : i32
    %c0_i32_1 = arith.constant 0 : i32
    return %c0_i32, %c0_i32_0 : i32, i32
  }
  func.func @transform_4(%arg0: i32) -> (i32, i32) {
    %c0_i32 = arith.constant 0 : i32
    %c0_i32_0 = arith.constant 0 : i32
    %c0_i32_1 = arith.constant 0 : i32
    return %c0_i32, %c0_i32_0 : i32, i32
  }
  func.func @transform_5(%arg0: i32) -> (i32, i32) {
    %c0_i32 = arith.constant 0 : i32
    %c0_i32_0 = arith.constant 0 : i32
    %c0_i32_1 = arith.constant 0 : i32
    return %c0_i32, %c0_i32_0 : i32, i32
  }
  func.func @transform_6(%arg0: i32) -> (i32, i32) {
    %c0_i32 = arith.constant 0 : i32
    %c0_i32_0 = arith.constant 0 : i32
    %c0_i32_1 = arith.constant 0 : i32
    return %c0_i32, %c0_i32_0 : i32, i32
  }
  func.func @transform_7(%arg0: i32) -> (i32, i32) {
    %c0_i32 = arith.constant 0 : i32
    %c0_i32_0 = arith.constant 0 : i32
    %c0_i32_1 = arith.constant 0 : i32
    return %c0_i32, %c0_i32_0 : i32, i32
  }
  func.func @transform_8(%arg0: i32) -> (i32, i32) {
    %c0_i32 = arith.constant 0 : i32
    %c0_i32_0 = arith.constant 0 : i32
    return %c0_i32, %arg0 : i32, i32
  }
}

</mosaic_0001>

<bundles_post_ra>
// kernel: tpu_custom_call.1
= control target key start
LH: loop header
LB: loop body
LE: loop exit
PB: predicated region body
PF: predicated region fallthrough
CT: control target
= control target key end

     0   :  { %v682_v2 = vmov 2   ;;  %v683_v3 = vmov 0   ;;  %v684_v5 = vmov 1   ;;  %s900_s0 = inlined_call_operand.vmem [shape: f32[2,32], index: 0, kind: input, shape index: {}]   ;;  %s901_s1 = inlined_call_operand.vmem [shape: f32[1,32], index: 1, kind: input, shape index: {}]   ;;  %s902_s2 = inlined_call_operand.vmem [shape: f32[64,3], index: 2, kind: input, shape index: {}]   ;;  %s903_s3 = inlined_call_operand.vmem [shape: f32[64,1], index: 3, kind: input, shape index: {}]   ;;  %s904_s4 = inlined_call_operand.vmem [shape: f32[64,64], index: 4, kind: input, shape index: {}]   ;;  %s905_s5 = inlined_call_operand.vmem [shape: f32[64,1], index: 5, kind: input, shape index: {}]   ;;  %s906_s6 = inlined_call_operand.vmem [shape: f32[2,64], index: 6, kind: input, shape index: {}]   ;;  %s907_s7 = inlined_call_operand.vmem [shape: f32[2,1], index: 7, kind: input, shape index: {}]   ;;  %s908_s8 = inlined_call_operand.hbm [shape: f32[2,32], index: 8, kind: output, shape index: {}]  }
   0x1   :  { %v38_v0 = vld [vmem:[%s902_s2 + $0x30] sm:$0xff]  ;;  %v37_v1 = vld [vmem:[%s902_s2 + $0x28] sm:$0xff]  ;;  %646 = vset.pattern.permute.xlu0 %v682_v2  ;;  %640 = vset.pattern.permute.xlu1 %v683_v3  ;;  %v39_v4 = vld [vmem:[%s902_s2 + $0x38] sm:$0xff] }
   0x2   :  { %72 = vperm.xlu1 %640, %v38_v0   ;;  %165 = vperm.xlu0 %646, %v37_v1   ;;  %v35_v6 = vld [vmem:[%s902_s2 + $0x18] sm:$0xff] }
   0x6   :  { %641 = vset.pattern.permute.xlu1 %v684_v5  ;;  %647 = vset.pattern.permute.xlu0 %v684_v5 }
   0x7   :  { %117 = vperm.xlu1 %641, %v38_v0   ;;  %121 = vperm.xlu0 %647, %v39_v4  }
   0x8   :  { %13 = vsyncpa [#allocation3], 0  ;;  %v33_v7 = vld [vmem:[%s902_s2 + $0x8] sm:$0xff]  ;;  %v36_v8 = vld [vmem:[%s902_s2 + $0x20] sm:$0xff]  ;;  %vm318_vm0 = vcmask 523264   ;;  %v80_v33 = vlaneseq  ;;  %vm686_vm1 = vmmov 0  }
   0x9   :  { %v205_v9 = vld [vmem:[%s903_s3 + $0x38] sm:$0xff]  ;;  %v34_v10 = vld [vmem:[%s902_s2 + $0x10] sm:$0xff]  ;;  %v203_v11 = vld [vmem:[%s903_s3 + $0x28] sm:$0xff]  ;;  %s687_s25 = smov [#allocation2]   ;;  %vm536_vm2 = vcmask 254976  }
   0xa   :  { %v32_v12 = vld [vmem:[%s902_s2] sm:$0xff]  ;;  %v201_v13 = vld [vmem:[%s903_s3 + $0x18] sm:$0xff]  ;;  %v204_v14 = vld [vmem:[%s903_s3 + $0x30] sm:$0xff]  ;;  %v81_v36 = vshrl.u32 %v80_v33, 7  ;;  %s544_s26 = sshll.u32 %s687_s25, 4  ;;  %s545_s26 = int_to_ptr.vmem [resolvable:$true] %s544_s26 }
   0xb   :  { %642 = vset.pattern.permute.xlu1 %v682_v2  ;;  %105 = vperm.xlu0 %647, %v35_v6   ;;  %v200_v15 = vld [vmem:[%s903_s3 + $0x10] sm:$0xff]  ;;  %v198_v16 = vld [vmem:[%s903_s3] sm:$0xff]  ;;  %v199_v22 = vld [vmem:[%s903_s3 + $0x8] sm:$0xff]  ;;  %s660_s27 = scalar_lea.vmem %s545_s26, 32  ;;  %p665_p1 = scmp.lt.s32.totalorder %s545_s26, %s545_s26 }
   0xc   :  { %173 = vperm.xlu1 %642, %v39_v4   ;;  %v276_v17 = vld [vmem:[%s905_s5 + $0x30] sm:$0xff]  ;;  %v274_v18 = vld [vmem:[%s905_s5 + $0x20] sm:$0xff]  ;;  %v277_v23 = vld [vmem:[%s905_s5 + $0x38] sm:$0xff]  ;;  %v82_v38 = vsub.s32 0, %v81_v36  ;;  %v126_v39 = vsub.s32 1, %v81_v36  ;;  %p661_p0 = scmp.ne.s32.totalorder %s545_s26, %s660_s27  ;;  %p666_p2 = scmp.lt.s32.totalorder %s660_s27, %s660_s27 }
   0xd   :  { %v272_v19 = vld [vmem:[%s905_s5 + $0x10] sm:$0xff]  ;;  %v270_v20 = vld [vmem:[%s905_s5] sm:$0xff]  ;;  %v275_v25 = vld [vmem:[%s905_s5 + $0x28] sm:$0xff] }
   0xe   :  { %v202_v21 = vld [vmem:[%s903_s3 + $0x20] sm:$0xff]  ;;  %v273_v26 = vld [vmem:[%s905_s5 + $0x18] sm:$0xff]  ;;  %v271_v27 = vld [vmem:[%s905_s5 + $0x8] sm:$0xff]  ;;  %p667_p3 = por %p666_p2, %p665_p1 }
   0xf   :  { %97 = vperm.xlu0 %647, %v33_v7   ;;  %v262_v24 = vld [vmem:[%s904_s4] sm:$0xff] }
  0x10   :  { %643 = vset.pattern.permute.xlu1 %v684_v5  ;;  %603 = vmatprep.mubr.msk.f32.mxu0 %vm318_vm0, %v262_v24  ;;  %v457_v28 = vld [vmem:[%s907_s7] sm:$0x3]  ;;  %p668_p4 = pnand %p667_p3, %p661_p0 }
  0x11   :  { %113 = vperm.xlu1 %643, %v37_v1   ;;  %v30_v41 = vld [vmem:[%s900_s0] sm:$0x3] }
  0x12   :  { %v831_v43 = vrot.slane %v30_v41, %v82_v38  ;;  %v833_v44 = vrot.slane %v30_v41, %v126_v39  ;;  %v840_v48 = vld [vmem:[%s901_s1] ss:$0 sm:$0xff] }
  0x13   :  { %654 = vset.pattern.permute.xlu0 %v683_v3 }
  0x14   :  { %77 = vperm.xlu0 %654, %v39_v4  }
  0x15   :  { %644 = vset.pattern.permute.xlu1 %v682_v2 }
  0x16   :  { %169 = vperm.xlu1 %644, %v38_v0  }
  0x18   :  { %67 = vperm.xlu0 %654, %v37_v1  }
  0x1a   :  { %645 = vset.pattern.permute.xlu1 %v684_v5 }
  0x1b   :  { %109 = vperm.xlu1 %645, %v36_v8  }
  0x1c   :  { %62 = vperm.xlu0 %654, %v36_v8  }
  0x1f   :  { %648 = vset.pattern.permute.xlu1 %v683_v3 }
  0x20   :  { %243 = vperm.xlu1 %648, %v205_v9   ;;  %52 = vperm.xlu0 %654, %v34_v10  }
  0x24   :  { %57 = vperm.xlu1 %648, %v35_v6   ;;  %233 = vperm.xlu0 %654, %v203_v11  }
  0x28   :  { %649 = vset.pattern.permute.xlu1 %v682_v2  ;;  %42 = vperm.xlu0 %654, %v32_v12  }
  0x29   :  { %161 = vperm.xlu1 %649, %v36_v8  }
  0x2c   :  { %223 = vperm.xlu0 %654, %v201_v13  }
  0x2d   :  { %650 = vset.pattern.permute.xlu1 %v683_v3 }
  0x2e   :  { %238 = vperm.xlu1 %650, %v204_v14  }
  0x30   :  { %218 = vperm.xlu0 %654, %v200_v15  }
  0x32   :  { %651 = vset.pattern.permute.xlu1 %v684_v5 }
  0x33   :  { %101 = vperm.xlu1 %651, %v34_v10  }
  0x34   :  { %208 = vperm.xlu0 %654, %v198_v16  }
  0x37   :  { %652 = vset.pattern.permute.xlu1 %v682_v2 }
  0x38   :  { %157 = vperm.xlu1 %652, %v35_v6   ;;  %310 = vperm.xlu0 %654, %v276_v17  }
  0x3c   :  { %653 = vset.pattern.permute.xlu1 %v683_v3  ;;  %300 = vperm.xlu0 %654, %v274_v18  }
  0x3d   :  { %47 = vperm.xlu1 %653, %v33_v7  }
  0x40   :  { %290 = vperm.xlu0 %654, %v272_v19  }
  0x41   :  { %655 = vset.pattern.permute.xlu1 %v682_v2 }
  0x42   :  { %153 = vperm.xlu1 %655, %v34_v10  }
  0x44   :  { %280 = vperm.xlu0 %654, %v270_v20  }
  0x46   :  { %656 = vset.pattern.permute.xlu1 %v683_v3 }
  0x47   :  { %228 = vperm.xlu1 %656, %v202_v21  }
  0x4b   :  { %657 = vset.pattern.permute.xlu1 %v684_v5 }
  0x4c   :  { %93 = vperm.xlu1 %657, %v32_v12  }
  0x50   :  { %658 = vset.pattern.permute.xlu1 %v682_v2 }
  0x51   :  { %149 = vperm.xlu1 %658, %v33_v7  }
  0x55   :  { %145 = vperm.xlu1 %658, %v32_v12  }
  0x59   :  { %659 = vset.pattern.permute.xlu1 %v683_v3 }
  0x5a   :  { %213 = vperm.xlu1 %659, %v199_v22  }
  0x5e   :  { %315 = vperm.xlu1 %659, %v277_v23  }
  0x62   :  { %305 = vperm.xlu1 %659, %v275_v25  }
  0x66   :  { %295 = vperm.xlu1 %659, %v273_v26  }
  0x6a   :  { %285 = vperm.xlu1 %659, %v271_v27  }
  0x6e   :  { %460 = vperm.xlu1 %659, %v457_v28  }
  0x7d   :  { %v73_v29 = vpop.permute.xlu1 %72  ;;  %v166_v30 = vpop.permute.xlu0 %165 }
  0x7e   :  { %v90_v63 = vmul.f32 %v831_v43, %v73_v29  ;;  %v187_v0 = vmul.f32 %v840_v48, %v166_v30 }
  0x82   :  { %v118_v31 = vpop.permute.xlu1 %117  ;;  %v122_v32 = vpop.permute.xlu0 %121 }
  0x83   :  { %v135_v46 = vmul.f32 %v833_v44, %v122_v32  ;;  %v134_v61 = vmul.f32 %v833_v44, %v118_v31 }
  0x85   :  { %v142_v4 = vadd.f32 %v134_v61, %v90_v63 }
  0x86   :  { %v106_v34 = vpop.permute.xlu0 %105 }
  0x87   :  { %v174_v35 = vpop.permute.xlu1 %173  ;;  %v131_v17 = vmul.f32 %v833_v44, %v106_v34 }
  0x88   :  { %v189_v52 = vmul.f32 %v840_v48, %v174_v35 }
  0x8a   :  { %v826_v37 = vpop.permute.xlu0 %97 }
  0x8c   :  { %v114_v40 = vpop.permute.xlu1 %113 }
  0x8d   :  { %v133_v62 = vmul.f32 %v833_v44, %v114_v40 }
  0x8f   :  { %v78_v42 = vpop.permute.xlu0 %77 }
  0x90   :  { %v91_v47 = vmul.f32 %v831_v43, %v78_v42 }
  0x91   :  { %v170_v45 = vpop.permute.xlu1 %169 }
  0x92   :  { %v143_v50 = vadd.f32 %v135_v46, %v91_v47  ;;  %v188_v1 = vmul.f32 %v840_v48, %v170_v45 }
  0x93   :  { %v68_v49 = vpop.permute.xlu0 %67 }
  0x94   :  { %v197_v53 = vadd.f32 %v189_v52, %v143_v50  ;;  %v89_v59 = vmul.f32 %v831_v43, %v68_v49  ;;  %v196_v7 = vadd.f32 %v188_v1, %v142_v4  ;;  %v267_v1 = vld [vmem:[%s904_s4 + $0x28] sm:$0xff]  ;;  %v685_v4 = vmov 0.0  }
  0x95   :  { %615 = vmatprep.subr.mxu1 %v685_v4  ;;  %631 = vmatprep.mubr.msk.f32.mxu1 %vm686_vm1, %v685_v4 }
  0x96   :  { %v110_v51 = vpop.permute.xlu1 %109  ;;  %v141_v2 = vadd.f32 %v133_v62, %v89_v59 }
  0x97   :  { %v63_v54 = vpop.permute.xlu0 %62  ;;  %v132_v19 = vmul.f32 %v833_v44, %v110_v51  ;;  %v129_v51 = vmul.f32 %v833_v44, %v826_v37  ;;  %v263_v37 = vld [vmem:[%s904_s4 + $0x8] sm:$0xff] }
  0x98   :  { %v195_v6 = vadd.f32 %v187_v0, %v141_v2  ;;  %v88_v20 = vmul.f32 %v831_v43, %v63_v54  ;;  %v268_v2 = vld [vmem:[%s904_s4 + $0x30] sm:$0xff] }
  0x9a   :  { %v140_v29 = vadd.f32 %v132_v19, %v88_v20 }
  0x9b   :  { %v244_v55 = vpop.permute.xlu1 %243  ;;  %v53_v60 = vpop.permute.xlu0 %52 }
  0x9c   :  { %v253_v56 = vadd.f32 %v244_v55, %v197_v53  ;;  %v86_v21 = vmul.f32 %v831_v43, %v53_v60 }
  0x9e   :  { %v261_v57 = vmax.f32 %v253_v56, 0.0 }
  0x9f   :  { %v58_v58 = vpop.permute.xlu1 %57  ;;  %v234_v5 = vpop.permute.xlu0 %233 }
  0xa0   :  { %587 = vmatprep.subr.mxu0 %v261_v57  ;;  %v251_v9 = vadd.f32 %v234_v5, %v195_v6  ;;  %v87_v18 = vmul.f32 %v831_v43, %v58_v58 }
  0xa1   :  { %588 = vmatpush3.msra.mxu0 %v261_v57 }
  0xa2   :  { %v259_v12 = vmax.f32 %v251_v9, 0.0  ;;  %v139_v24 = vadd.f32 %v131_v17, %v87_v18 }
  0xa3   :  { %v43_v15 = vpop.permute.xlu0 %42 }
  0xa4   :  { %v162_v3 = vpop.permute.xlu1 %161  ;;  %v84_v50 = vmul.f32 %v831_v43, %v43_v15 }
  0xa5   :  { %v186_v25 = vmul.f32 %v840_v48, %v162_v3  ;;  %v269_v3 = vld [vmem:[%s904_s4 + $0x38] sm:$0xff] }
  0xa7   :  { %v224_v27 = vpop.permute.xlu0 %223  ;;  %v194_v33 = vadd.f32 %v186_v25, %v140_v29 }
  0xa9   :  { %v239_v8 = vpop.permute.xlu1 %238 }
  0xaa   :  { %v252_v10 = vadd.f32 %v239_v8, %v196_v7 }
  0xab   :  { %v219_v38 = vpop.permute.xlu0 %218 }
  0xac   :  { %v260_v11 = vmax.f32 %v252_v10, 0.0 }
  0xae   :  { %v102_v13 = vpop.permute.xlu1 %101  ;;  %589 = vmatprep.subr.mxu0 %v260_v11 }
  0xaf   :  { %590 = vmatpush3.msra.mxu0 %v260_v11  ;;  %v130_v22 = vmul.f32 %v833_v44, %v102_v13  ;;  %v209_v59 = vpop.permute.xlu0 %208 }
  0xb0   :  { %591 = vmatprep.subr.mxu0 %v259_v12 }
  0xb1   :  { %592 = vmatpush3.msra.mxu0 %v259_v12  ;;  %v138_v30 = vadd.f32 %v130_v22, %v86_v21 }
  0xb3   :  { %v158_v14 = vpop.permute.xlu1 %157  ;;  %v311_v9 = vpop.permute.xlu0 %310 }
  0xb4   :  { %v185_v23 = vmul.f32 %v840_v48, %v158_v14 }
  0xb6   :  { %v193_v31 = vadd.f32 %v185_v23, %v139_v24 }
  0xb7   :  { %v301_v14 = vpop.permute.xlu0 %300 }
  0xb8   :  { %v48_v16 = vpop.permute.xlu1 %47  ;;  %v249_v36 = vadd.f32 %v224_v27, %v193_v31 }
  0xb9   :  { %v85_v49 = vmul.f32 %v831_v43, %v48_v16  ;;  %v264_v43 = vld [vmem:[%s904_s4 + $0x10] sm:$0xff] }
  0xba   :  { %v257_v42 = vmax.f32 %v249_v36, 0.0 }
  0xbb   :  { %v137_v56 = vadd.f32 %v129_v51, %v85_v49  ;;  %v291_v24 = vpop.permute.xlu0 %290 }
  0xbd   :  { %v154_v26 = vpop.permute.xlu1 %153 }
  0xbe   :  { %v184_v28 = vmul.f32 %v840_v48, %v154_v26 }
  0xc0   :  { %v192_v32 = vadd.f32 %v184_v28, %v138_v30 }
  0xc2   :  { %v229_v34 = vpop.permute.xlu1 %228  ;;  %v248_v40 = vadd.f32 %v219_v38, %v192_v32  ;;  %v281_v32 = vpop.permute.xlu0 %280  ;;  %v456_v38 = vld [vmem:[%s906_s6] sm:$0x3] }
  0xc3   :  { %v250_v35 = vadd.f32 %v229_v34, %v194_v33 }
  0xc4   :  { %v256_v45 = vmax.f32 %v248_v40, 0.0 }
  0xc5   :  { %v258_v39 = vmax.f32 %v250_v35, 0.0 }
  0xc7   :  { %v94_v41 = vpop.permute.xlu1 %93  ;;  %593 = vmatprep.subr.mxu0 %v258_v39 }
  0xc8   :  { %594 = vmatpush3.msra.mxu0 %v258_v39  ;;  %v128_v47 = vmul.f32 %v833_v44, %v94_v41  ;;  %v265_v44 = vld [vmem:[%s904_s4 + $0x18] sm:$0xff] }
  0xc9   :  { %595 = vmatprep.subr.mxu0 %v257_v42 }
  0xca   :  { %596 = vmatpush3.msra.mxu0 %v257_v42  ;;  %v136_v54 = vadd.f32 %v128_v47, %v84_v50 }
  0xcb   :  { %597 = vmatprep.subr.mxu0 %v256_v45 }
  0xcc   :  { %v150_v46 = vpop.permute.xlu1 %149  ;;  %598 = vmatpush3.msra.mxu0 %v256_v45 }
  0xcd   :  { %v183_v52 = vmul.f32 %v840_v48, %v150_v46 }
  0xcf   :  { %v191_v58 = vadd.f32 %v183_v52, %v137_v56 }
  0xd0   :  { %v146_v53 = vpop.permute.xlu1 %145 }
  0xd1   :  { %v182_v55 = vmul.f32 %v840_v48, %v146_v53  ;;  %v266_v48 = vld [vmem:[%s904_s4 + $0x20] sm:$0xff] }
  0xd3   :  { %v190_v57 = vadd.f32 %v182_v55, %v136_v54 }
  0xd5   :  { %v214_v60 = vpop.permute.xlu1 %213  ;;  %v246_v62 = vadd.f32 %v209_v59, %v190_v57 }
  0xd6   :  { %v247_v61 = vadd.f32 %v214_v60, %v191_v58 }
  0xd7   :  { %v254_v0 = vmax.f32 %v246_v62, 0.0 }
  0xd8   :  { %v255_v63 = vmax.f32 %v247_v61, 0.0 }
  0xd9   :  { %v316_v7 = vpop.permute.xlu1 %315 }
  0xda   :  { %599 = vmatprep.subr.mxu0 %v255_v63 }
  0xdb   :  { %600 = vmatpush3.msra.mxu0 %v255_v63 }
  0xdc   :  { %601 = vmatprep.subr.mxu0 %v254_v0 }
  0xdd   :  { %602 = vmatpush3.msra.mxu0 %v254_v0  ;;  %v306_v12 = vpop.permute.xlu1 %305 }
  0xde   :  { %604 = vmatmul.mubr.msk.f32.vlgmr.msra.gmra.mxu0 %vm318_vm0, %v263_v37 }
  0xdf   :  { %606 = vmatprep.mubr.msk.f32.mxu0 %vm318_vm0, %v264_v43 }
  0xe1   :  { %v296_v21 = vpop.permute.xlu1 %295 }
  0xe2   :  { %607 = vmatmul.mubr.msk.f32.gmra.mxu0 %vm318_vm0, %v265_v44 }
  0xe3   :  { %609 = vmatprep.mubr.msk.f32.mxu0 %vm318_vm0, %v266_v48 }
  0xe5   :  { %v286_v29 = vpop.permute.xlu1 %285 }
  0xe6   :  { %610 = vmatmul.mubr.msk.f32.gmra.mxu0 %vm318_vm0, %v267_v1 }
  0xe7   :  { %612 = vmatprep.mubr.msk.f32.mxu0 %vm318_vm0, %v268_v2 }
  0xe9   :  { %v461_v39 = vpop.permute.xlu1 %460 }
  0xea   :  { %613 = vmatmul.mubr.msk.f32.gmra.mxu0 %vm318_vm0, %v269_v3 }
 0x19e   :  { %v605_v5 = vpop.f32.mrf.mxu0 }
 0x19f   :  { %v415_v30 = vadd.f32 %v605_v5, %v286_v29 }
 0x1a0   :  { %v409_v6 = vpop.f32.mrf.mxu0 }
 0x1a1   :  { %v410_v33 = vadd.f32 %v409_v6, %v281_v32  ;;  %v449_v35 = vmax.f32 %v415_v30, 0.0 }
 0x1a2   :  { %v608_v8 = vpop.f32.mrf.mxu0 }
 0x1a3   :  { %v425_v25 = vadd.f32 %v608_v8, %v296_v21  ;;  %v448_v36 = vmax.f32 %v410_v33, 0.0 }
 0x1a4   :  { %v419_v10 = vpop.f32.mrf.mxu0 }
 0x1a5   :  { %v420_v27 = vadd.f32 %v419_v10, %v291_v24  ;;  %v451_v31 = vmax.f32 %v425_v25, 0.0 }
 0x1a6   :  { %v611_v11 = vpop.f32.mrf.mxu0 }
 0x1a7   :  { %v435_v18 = vadd.f32 %v611_v11, %v306_v12  ;;  %v450_v34 = vmax.f32 %v420_v27, 0.0 }
 0x1a8   :  { %v429_v13 = vpop.f32.mrf.mxu0 }
 0x1a9   :  { %v430_v22 = vadd.f32 %v429_v13, %v301_v14  ;;  %v453_v26 = vmax.f32 %v435_v18, 0.0 }
 0x1aa   :  { %v614_v15 = vpop.f32.mrf.mxu0 }
 0x1ab   :  { %v445_v16 = vadd.f32 %v614_v15, %v316_v7  ;;  %v452_v28 = vmax.f32 %v430_v22, 0.0 }
 0x1ac   :  { %v439_v17 = vpop.f32.mrf.mxu0 }
 0x1ad   :  { %v455_v19 = vmax.f32 %v445_v16, 0.0  ;;  %v440_v20 = vadd.f32 %v439_v17, %v311_v9 }
 0x1af   :  { %v454_v23 = vmax.f32 %v440_v20, 0.0  ;;  %616 = vmatpush3.msra.mxu1 %v455_v19 }
 0x1b0   :  { %617 = vmatprep.subr.mxu1 %v685_v4 }
 0x1b1   :  { %618 = vmatpush3.msra.mxu1 %v454_v23 }
 0x1b2   :  { %619 = vmatprep.subr.mxu1 %v685_v4 }
 0x1b3   :  { %620 = vmatpush3.msra.mxu1 %v453_v26 }
 0x1b4   :  { %621 = vmatprep.subr.mxu1 %v685_v4 }
 0x1b5   :  { %622 = vmatpush3.msra.mxu1 %v452_v28 }
 0x1b6   :  { %623 = vmatprep.subr.mxu1 %v685_v4 }
 0x1b7   :  { %624 = vmatpush3.msra.mxu1 %v451_v31 }
 0x1b8   :  { %625 = vmatprep.subr.mxu1 %v685_v4 }
 0x1b9   :  { %626 = vmatpush3.msra.mxu1 %v450_v34 }
 0x1ba   :  { %627 = vmatprep.subr.mxu1 %v685_v4 }
 0x1bb   :  { %628 = vmatpush3.msra.mxu1 %v449_v35 }
 0x1bc   :  { %629 = vmatprep.subr.mxu1 %v685_v4 }
 0x1bd   :  { %630 = vmatpush3.msra.mxu1 %v448_v36 }
 0x1be   :  { %632 = vmatmul.mubr.msk.f32.vlgmr.msra.gmra.mxu1 %vm318_vm0, %v456_v38 }
 0x27e   :  { %v532_v40 = vpop.f32.mrf.mxu1 }
 0x27f   :  { %v533_v41 = vadd.f32 %v532_v40, %v461_v39 }
 0x280   :  { %v633_v42 = vpop.f32.mrf.mxu1 }
 0x281   :  { %537 = vst.msk [vmem:[#allocation2] sm:$0x3] %vm536_vm2, %v533_v41 }
 0x282   :  { %671 = shalt.err (!%p668_p4)
}
 0x283   :  { %547 = dma.vmem_to_hbm [thread:$0]  %s545_s26, 32, %s908_s8, [#allocation3]  }
 0x284   :  { %680 = dma.done.wait [#allocation3], 32  }
 0x285   :  { %681 = vsyncadd [#allocation3], 4294967264 }
 0x286   :  { %551 = vsyncpa [#allocation3], 1 }

</bundles_post_ra>
